<compile_context>
chip_gen: v7x
topology: tpu7x:2x2x1
jax: 0.10.0
libtpu: 0.0.40
codegen_flags: <defaults>
</compile_context>

<pallas_src>
import math
import functools

import jax
import jax.numpy as jnp
from jax.experimental import pallas as pl
from jax.experimental.pallas import tpu as pltpu

LN_EPS = 1e-5


def _round_up(x, m):
    return (x + m - 1) // m * m


def _patch_embed_kernel(x_ref, w_ref, b_ref, g_ref, bt_ref, o_ref):
    """Fused epilogue: (patches @ W + b) followed by LayerNorm over embed_dim."""
    acc = jnp.dot(x_ref[...].astype(jnp.float32),
                  w_ref[...].astype(jnp.float32),
                  preferred_element_type=jnp.float32)
    acc = acc + b_ref[...].astype(jnp.float32)
    mu = jnp.mean(acc, axis=-1, keepdims=True)
    var = jnp.mean(jnp.square(acc - mu), axis=-1, keepdims=True)
    y = (acc - mu) * jax.lax.rsqrt(var + LN_EPS)
    o_ref[...] = (y * g_ref[...].astype(jnp.float32)
                  + bt_ref[...].astype(jnp.float32)).astype(o_ref.dtype)


def patch_embed_forward(x_nchw, proj_w, proj_b, ln_g, ln_b, *, patch_size):
    """Equivalent of PatchEmbed.forward: returns (tokens (B, Hp*Wp, E), Hp, Wp)."""
    B, C, H, W = x_nchw.shape
    P = patch_size
    Hp, Wp = H // P, W // P
    E = proj_w.shape[0]
    K = C * P * P

    # Crop to a multiple of the patch size (matches Conv2d's VALID/floor behaviour).
    x = x_nchw[:, :, :Hp * P, :Wp * P]

    # Non-overlapping patch extraction: pure layout change, no data duplication.
    # Row ordering (b, ph, pw) and column ordering (c, kh, kw) match the
    # PyTorch Conv2d weight layout (E, C, P, P) flattened below.
    cols = (x.reshape(B, C, Hp, P, Wp, P)
              .transpose(0, 2, 4, 1, 3, 5)
              .reshape(B * Hp * Wp, K))
    w_flat = proj_w.reshape(E, K).T                       # (K, E)

    M = B * Hp * Wp
    TM = min(256, _round_up(M, 8))                        # token-row tile
    M_pad = _round_up(M, TM)
    if M_pad != M:
        cols = jnp.pad(cols, ((0, M_pad - M), (0, 0)))

    out = pl.pallas_call(
        _patch_embed_kernel,
        out_shape=jax.ShapeDtypeStruct((M_pad, E), x_nchw.dtype),
        grid=(M_pad // TM,),
        in_specs=[
            pl.BlockSpec((TM, K), lambda i: (i, 0)),      # patch rows (tiled)
            pl.BlockSpec((K, E), lambda i: (0, 0)),       # weight (resident)
            pl.BlockSpec((1, E), lambda i: (0, 0)),       # conv bias
            pl.BlockSpec((1, E), lambda i: (0, 0)),       # LN gamma
            pl.BlockSpec((1, E), lambda i: (0, 0)),       # LN beta
        ],
        out_specs=pl.BlockSpec((TM, E), lambda i: (i, 0)),
        compiler_params=pltpu.CompilerParams(
            dimension_semantics=("parallel",)),           # v7x: both TCs
    )(cols, w_flat, proj_b.reshape(1, E), ln_g.reshape(1, E), ln_b.reshape(1, E))

    tokens = out[:M].reshape(B, Hp * Wp, E)
    return tokens, Hp, Wp


if __name__ == "__main__":
    # Small shapes consistent with the module: batch=2, in_chans=4, img=16,
    # patch_size=4, embed_dim=128 (multiple of 128 -> lane-dense stores).
    B, C, IMG, P, E = 2, 4, 16, 4, 128

    key = jax.random.PRNGKey(0)
    kx, kw = jax.random.split(key)
    x = jax.random.normal(kx, (B, C, IMG, IMG), jnp.float32)

    # Conv2d init from the module: N(0, sqrt(2 / fan_out)), zero bias; LN = (1, 0).
    fan_out = P * P * E
    proj_w = jax.random.normal(kw, (E, C, P, P), jnp.float32) * math.sqrt(2.0 / fan_out)
    proj_b = jnp.zeros((E,), jnp.float32)
    ln_g = jnp.ones((E,), jnp.float32)
    ln_b = jnp.zeros((E,), jnp.float32)

    fwd = jax.jit(functools.partial(patch_embed_forward, patch_size=P))
    tokens, Hp, Wp = fwd(x, proj_w, proj_b, ln_g, ln_b)
    jax.block_until_ready(tokens)

    # Pure-JAX reference (conv + bias + LayerNorm) for a correctness check.
    ref = jax.lax.conv_general_dilated(
        x, proj_w, window_strides=(P, P), padding="VALID",
        dimension_numbers=("NCHW", "OIHW", "NCHW"),
        precision=jax.lax.Precision.HIGHEST)
    ref = ref.reshape(B, E, Hp * Wp).transpose(0, 2, 1) + proj_b
    mu = ref.mean(-1, keepdims=True)
    var = ((ref - mu) ** 2).mean(-1, keepdims=True)
    ref = (ref - mu) * jax.lax.rsqrt(var + LN_EPS) * ln_g + ln_b

    assert tokens.shape == (B, Hp * Wp, E)
    assert (Hp, Wp) == (IMG // P, IMG // P)
    assert bool(jnp.all(jnp.isfinite(tokens)))
    assert bool(jnp.allclose(tokens, ref, atol=1e-2, rtol=1e-2))
    print("KERNEL_OK")
</pallas_src>

<mosaic_0001>
module attributes {stable_mosaic.version = 11 : i64} {
  func.func @_patch_embed_kernel(%arg0: i32, %arg1: memref<32x64xf32, #tpu.memory_space<vmem>>, %arg2: memref<64x128xf32, #tpu.memory_space<vmem>>, %arg3: memref<1x128xf32, #tpu.memory_space<vmem>>, %arg4: memref<1x128xf32, #tpu.memory_space<vmem>>, %arg5: memref<1x128xf32, #tpu.memory_space<vmem>>, %arg6: memref<32x128xf32, #tpu.memory_space<vmem>>) attributes {dimension_semantics = [#tpu.dimension_semantics<parallel>], iteration_bounds = array<i64: 1>, scalar_prefetch = 0 : i64, scratch_operands = 0 : i64, tpu.core_type = #tpu.core_type<tc>, window_params = [{transform_indices = @transform_0, window_bounds = array<i64: 32, 64>}, {pipeline_mode = #tpu.pipeline_mode<synchronous>, transform_indices = @transform_1, window_bounds = array<i64: 64, 128>}, {pipeline_mode = #tpu.pipeline_mode<synchronous>, transform_indices = @transform_2, window_bounds = array<i64: 1, 128>}, {pipeline_mode = #tpu.pipeline_mode<synchronous>, transform_indices = @transform_3, window_bounds = array<i64: 1, 128>}, {pipeline_mode = #tpu.pipeline_mode<synchronous>, transform_indices = @transform_4, window_bounds = array<i64: 1, 128>}, {transform_indices = @transform_5, window_bounds = array<i64: 32, 128>}]} {
    %c0 = arith.constant 0 : index
    %c0_0 = arith.constant 0 : index
    %0 = vector.load %arg1[%c0, %c0_0] : memref<32x64xf32, #tpu.memory_space<vmem>>, vector<32x64xf32>
    %c0_1 = arith.constant 0 : index
    %c0_2 = arith.constant 0 : index
    %1 = vector.load %arg2[%c0_1, %c0_2] : memref<64x128xf32, #tpu.memory_space<vmem>>, vector<64x128xf32>
    %cst = arith.constant dense<0.000000e+00> : vector<32x128xf32>
    %2 = tpu.matmul %0, %1, %cst {dimension_numbers = #tpu.dot_dimension_numbers<[1], [0], [0], [1], [0, 0, 1, 1], [], []>} : vector<32x64xf32>, vector<64x128xf32>, vector<32x128xf32> -> vector<32x128xf32>
    %c0_3 = arith.constant 0 : index
    %c0_4 = arith.constant 0 : index
    %3 = vector.load %arg3[%c0_3, %c0_4] : memref<1x128xf32, #tpu.memory_space<vmem>>, vector<1x128xf32>
    %4 = vector.broadcast %3 : vector<1x128xf32> to vector<32x128xf32>
    %5 = arith.addf %2, %4 : vector<32x128xf32>
    %cst_5 = arith.constant dense<0.000000e+00> : vector<32xf32>
    %6 = vector.multi_reduction <add>, %5, %cst_5 [1] : vector<32x128xf32> to vector<32xf32>
    %7 = vector.shape_cast %6 : vector<32xf32> to vector<32x1xf32>
    %cst_6 = arith.constant 1.280000e+02 : f32
    %8 = vector.broadcast %cst_6 : f32 to vector<32x1xf32>
    %9 = arith.divf %7, %8 : vector<32x1xf32>
    %10 = vector.broadcast %9 : vector<32x1xf32> to vector<32x128xf32>
    %11 = arith.subf %5, %10 : vector<32x128xf32>
    %12 = arith.mulf %11, %11 : vector<32x128xf32>
    %cst_7 = arith.constant dense<0.000000e+00> : vector<32xf32>
    %13 = vector.multi_reduction <add>, %12, %cst_7 [1] : vector<32x128xf32> to vector<32xf32>
    %14 = vector.shape_cast %13 : vector<32xf32> to vector<32x1xf32>
    %cst_8 = arith.constant 1.280000e+02 : f32
    %15 = vector.broadcast %cst_8 : f32 to vector<32x1xf32>
    %16 = arith.divf %14, %15 : vector<32x1xf32>
    %17 = vector.broadcast %9 : vector<32x1xf32> to vector<32x128xf32>
    %18 = arith.subf %5, %17 : vector<32x128xf32>
    %cst_9 = arith.constant 9.99999974E-6 : f32
    %19 = vector.broadcast %cst_9 : f32 to vector<32x1xf32>
    %20 = arith.addf %16, %19 : vector<32x1xf32>
    %21 = math.rsqrt %20 : vector<32x1xf32>
    %22 = vector.broadcast %21 : vector<32x1xf32> to vector<32x128xf32>
    %23 = arith.mulf %18, %22 : vector<32x128xf32>
    %c0_10 = arith.constant 0 : index
    %c0_11 = arith.constant 0 : index
    %24 = vector.load %arg4[%c0_10, %c0_11] : memref<1x128xf32, #tpu.memory_space<vmem>>, vector<1x128xf32>
    %25 = vector.broadcast %24 : vector<1x128xf32> to vector<32x128xf32>
    %26 = arith.mulf %23, %25 : vector<32x128xf32>
    %c0_12 = arith.constant 0 : index
    %c0_13 = arith.constant 0 : index
    %27 = vector.load %arg5[%c0_12, %c0_13] : memref<1x128xf32, #tpu.memory_space<vmem>>, vector<1x128xf32>
    %28 = vector.broadcast %27 : vector<1x128xf32> to vector<32x128xf32>
    %29 = arith.addf %26, %28 : vector<32x128xf32>
    %c0_14 = arith.constant 0 : index
    %c0_15 = arith.constant 0 : index
    %30 = vector.load %arg6[%c0_14, %c0_15] : memref<32x128xf32, #tpu.memory_space<vmem>>, vector<32x128xf32>
    tpu.vector_store %arg6[%c0_14, %c0_15], %29 {strides = array<i32>} : memref<32x128xf32, #tpu.memory_space<vmem>>, vector<32x128xf32>,
    return
  }
  func.func @transform_0(%arg0: i32) -> (i32, i32) {
    %c0_i32 = arith.constant 0 : i32
    %c0_i32_0 = arith.constant 0 : i32
    return %arg0, %c0_i32 : i32, i32
  }
  func.func @transform_1(%arg0: i32) -> (i32, i32) {
    %c0_i32 = arith.constant 0 : i32
    %c0_i32_0 = arith.constant 0 : i32
    %c0_i32_1 = arith.constant 0 : i32
    return %c0_i32, %c0_i32_0 : i32, i32
  }
  func.func @transform_2(%arg0: i32) -> (i32, i32) {
    %c0_i32 = arith.constant 0 : i32
    %c0_i32_0 = arith.constant 0 : i32
    %c0_i32_1 = arith.constant 0 : i32
    return %c0_i32, %c0_i32_0 : i32, i32
  }
  func.func @transform_3(%arg0: i32) -> (i32, i32) {
    %c0_i32 = arith.constant 0 : i32
    %c0_i32_0 = arith.constant 0 : i32
    %c0_i32_1 = arith.constant 0 : i32
    return %c0_i32, %c0_i32_0 : i32, i32
  }
  func.func @transform_4(%arg0: i32) -> (i32, i32) {
    %c0_i32 = arith.constant 0 : i32
    %c0_i32_0 = arith.constant 0 : i32
    %c0_i32_1 = arith.constant 0 : i32
    return %c0_i32, %c0_i32_0 : i32, i32
  }
  func.func @transform_5(%arg0: i32) -> (i32, i32) {
    %c0_i32 = arith.constant 0 : i32
    %c0_i32_0 = arith.constant 0 : i32
    return %arg0, %c0_i32 : i32, i32
  }
}

</mosaic_0001>

<bundles_post_ra>
// kernel: patch_embed_forward.1
= control target key start
LH: loop header
LB: loop body
LE: loop exit
PB: predicated region body
PF: predicated region fallthrough
CT: control target
= control target key end

     0   :  { %vm40_vm0 = vcmask 523264   ;;  %s419_s0 = inlined_call_operand.vmem [shape: f32[32,64], index: 0, kind: input, shape index: {}]   ;;  %s420_s1 = inlined_call_operand.vmem [shape: f32[64,128], index: 1, kind: input, shape index: {}]   ;;  %s421_s2 = inlined_call_operand.vmem [shape: f32[1,128], index: 2, kind: input, shape index: {}]   ;;  %s422_s3 = inlined_call_operand.vmem [shape: f32[1,128], index: 3, kind: input, shape index: {}]   ;;  %s423_s4 = inlined_call_operand.vmem [shape: f32[1,128], index: 4, kind: input, shape index: {}]   ;;  %s424_s5 = inlined_call_operand.hbm [shape: f32[32,128], index: 5, kind: output, shape index: {}]  }
   0x1   :  { %v25_v0 = vld [vmem:[%s420_s1] sm:$0xff]  ;;  %v26_v1 = vld [vmem:[%s420_s1 + $0x8] sm:$0xff]  ;;  %v27_v2 = vld [vmem:[%s420_s1 + $0x10] sm:$0xff] }
   0x2   :  { %v266_v3 = vpack.c.bf16 %v26_v1, %v25_v0  ;;  %v28_v4 = vld [vmem:[%s420_s1 + $0x18] sm:$0xff]  ;;  %v29_v6 = vld [vmem:[%s420_s1 + $0x20] sm:$0xff]  ;;  %v30_v7 = vld [vmem:[%s420_s1 + $0x28] sm:$0xff] }
   0x3   :  { %v270_v5 = vpack.c.bf16 %v28_v4, %v27_v2  ;;  %v21_v8 = vld [vmem:[%s419_s0] sm:$0xff]  ;;  %v23_v9 = vld [vmem:[%s419_s0 + $0x10] sm:$0xff] }
   0x4   :  { %267 = vmatprep.subr.bf16.mxu0 %v266_v3  ;;  %282 = vmatprep.subr.bf16.mxu1 %v266_v3 }
   0x5   :  { %269 = vmatpush3.bf16.msra.mxu0 %v266_v3  ;;  %286 = vmatpush3.bf16.msra.mxu1 %v266_v3 }
   0x6   :  { %10 = vsyncpa [#allocation3], 0  ;;  %271 = vmatprep.subr.bf16.mxu0 %v270_v5  ;;  %283 = vmatprep.subr.bf16.mxu1 %v270_v5  ;;  %v274_v10 = vpack.c.bf16 %v30_v7, %v29_v6  ;;  %v31_v11 = vld [vmem:[%s420_s1 + $0x30] sm:$0xff]  ;;  %v32_v12 = vld [vmem:[%s420_s1 + $0x38] sm:$0xff]  ;;  %s325_s20 = smov [#allocation2]  }
   0x7   :  { %260 = vmatprep.mubr.msk.f32.mxu0 %vm40_vm0, %v21_v8  ;;  %263 = vmatprep.mubr.msk.f32.mxu1 %vm40_vm0, %v23_v9  ;;  %v278_v13 = vpack.c.bf16 %v32_v12, %v31_v11  ;;  %v22_v14 = vld [vmem:[%s419_s0 + $0x8] sm:$0xff]  ;;  %v24_v15 = vld [vmem:[%s419_s0 + $0x18] sm:$0xff]  ;;  %v225_v16 = vld [vmem:[%s421_s2] ss:$0 sm:$0xff] }
   0x8   :  { %v230_v54 = vld [vmem:[%s422_s3] ss:$0 sm:$0xff]  ;;  %s214_s3 = sshll.u32 %s325_s20, 4  ;;  %s215_s3 = int_to_ptr.vmem [resolvable:$true] %s214_s3 }
   0x9   :  { %273 = vmatpush3.bf16.msra.mxu0 %v270_v5  ;;  %287 = vmatpush3.bf16.msra.mxu1 %v270_v5  ;;  %v231_v56 = vld [vmem:[%s423_s4] ss:$0 sm:$0xff]  ;;  %s301_s4 = scalar_lea.vmem %s215_s3, 512  ;;  %p306_p1 = scmp.lt.s32.totalorder %s215_s3, %s215_s3 }
   0xa   :  { %275 = vmatprep.subr.bf16.mxu0 %v274_v10  ;;  %284 = vmatprep.subr.bf16.mxu1 %v274_v10  ;;  %p302_p0 = scmp.ne.s32.totalorder %s215_s3, %s301_s4  ;;  %p307_p2 = scmp.lt.s32.totalorder %s301_s4, %s301_s4 }
   0xc   :  { %p308_p3 = por %p307_p2, %p306_p1 }
   0xd   :  { %277 = vmatpush3.bf16.msra.mxu0 %v274_v10  ;;  %288 = vmatpush3.bf16.msra.mxu1 %v274_v10 }
   0xe   :  { %279 = vmatprep.subr.bf16.mxu0 %v278_v13  ;;  %285 = vmatprep.subr.bf16.mxu1 %v278_v13  ;;  %p309_p4 = pnand %p308_p3, %p302_p0 }
  0x11   :  { %281 = vmatpush3.bf16.msra.mxu0 %v278_v13  ;;  %289 = vmatpush3.bf16.msra.mxu1 %v278_v13 }
  0x14   :  { %261 = vmatmul.mubr.msk.f32.vlgmr.msra.gmra.mrb[0].mxu0 %vm40_vm0, %v22_v14  ;;  %264 = vmatmul.mubr.msk.f32.vlgmr.msra.gmra.mrb[0].mxu1 %vm40_vm0, %v24_v15 }
  0xe7   :  { %v262_v17 = vpop.f32.mrb[0].mxu0  ;;  %v265_v18 = vpop.f32.mrb[0].mxu1 }
  0xe8   :  { %v119_v19 = vpop.f32.mrb[1].mxu0  ;;  %v129_v20 = vpop.f32.mrb[1].mxu1  ;;  %v135_v23 = vadd.f32 %v265_v18, %v225_v16  ;;  %v125_v24 = vadd.f32 %v262_v17, %v225_v16 }
  0xe9   :  { %v120_v21 = vadd.f32 %v225_v16, %v119_v19  ;;  %v130_v22 = vadd.f32 %v225_v16, %v129_v20 }
  0xeb   :  { %142 = vadd.xlane.f32.xlu1 %v130_v22  ;;  %138 = vadd.xlane.f32.xlu0 %v120_v21 }
  0xef   :  { %144 = vadd.xlane.f32.xlu1 %v135_v23  ;;  %140 = vadd.xlane.f32.xlu0 %v125_v24 }
 0x178   :  { %v143_v25 = vpop.xlane.xlu1 %142  ;;  %v139_v26 = vpop.xlane.xlu0 %138 }
 0x179   :  { %v149_v27 = vmul.f32 0.0078125, %v143_v25  ;;  %v147_v28 = vmul.f32 0.0078125, %v139_v26 }
 0x17b   :  { %v151_v29 = vsub.f32 %v120_v21, %v147_v28  ;;  %v153_v32 = vsub.f32 %v130_v22, %v149_v27 }
 0x17c   :  { %v145_v30 = vpop.xlane.xlu1 %144  ;;  %v141_v31 = vpop.xlane.xlu0 %140 }
 0x17d   :  { %v150_v33 = vmul.f32 0.0078125, %v145_v30  ;;  %v148_v34 = vmul.f32 0.0078125, %v141_v31  ;;  %v155_v35 = vmul.f32 %v151_v29, %v151_v29  ;;  %v157_v38 = vmul.f32 %v153_v32, %v153_v32 }
 0x17f   :  { %v152_v36 = vsub.f32 %v125_v24, %v148_v34  ;;  %159 = vadd.xlane.f32.xlu0 %v155_v35  ;;  %v154_v37 = vsub.f32 %v135_v23, %v150_v33 }
 0x181   :  { %v156_v39 = vmul.f32 %v152_v36, %v152_v36  ;;  %v158_v40 = vmul.f32 %v154_v37, %v154_v37 }
 0x183   :  { %163 = vadd.xlane.f32.xlu0 %v157_v38  ;;  %161 = vadd.xlane.f32.xlu1 %v156_v39 }
 0x187   :  { %165 = vadd.xlane.f32.xlu1 %v158_v40 }
 0x20c   :  { %v160_v41 = vpop.xlane.xlu0 %159 }
 0x20d   :  { %v167_v42 = vmul.f32 0.0078125, %v160_v41 }
 0x20f   :  { %v171_v43 = vadd.f32 1e-05, %v167_v42 }
 0x210   :  { %v162_v44 = vpop.xlane.xlu1 %161  ;;  %v164_v45 = vpop.xlane.xlu0 %163 }
 0x211   :  { %293 = vrsqrt.f32 %v171_v43  ;;  %v168_v46 = vmul.f32 0.0078125, %v162_v44  ;;  %v169_v47 = vmul.f32 0.0078125, %v164_v45 }
 0x213   :  { %v172_v48 = vadd.f32 1e-05, %v168_v46  ;;  %v173_v49 = vadd.f32 1e-05, %v169_v47 }
 0x214   :  { %v166_v50 = vpop.xlane.xlu1 %165 }
 0x215   :  { %295 = vrsqrt.f32 %v172_v48  ;;  %v170_v51 = vmul.f32 0.0078125, %v166_v50 }
 0x216   :  { %297 = vrsqrt.f32 %v173_v49 }
 0x217   :  { %v174_v52 = vadd.f32 1e-05, %v170_v51 }
 0x219   :  { %299 = vrsqrt.f32 %v174_v52 }
 0x21b   :  { %v294_v53 = vpop.eup %293 }
 0x21c   :  { %v179_v55 = vmul.f32 %v294_v53, %v151_v29 }
 0x21e   :  { %v190_v57 = vmul.f32 %v230_v54, %v179_v55 }
 0x21f   :  { %v296_v58 = vpop.eup %295 }
 0x220   :  { %v298_v59 = vpop.eup %297  ;;  %v180_v60 = vmul.f32 %v296_v58, %v152_v36  ;;  %v201_v61 = vadd.f32 %v231_v56, %v190_v57 }
 0x221   :  { %v181_v62 = vmul.f32 %v298_v59, %v153_v32 }
 0x222   :  { %v191_v63 = vmul.f32 %v230_v54, %v180_v60  ;;  %205 = vst [vmem:[#allocation2] sm:$0xff] %v201_v61 }
 0x223   :  { %v300_v0 = vpop.eup %299  ;;  %v192_v1 = vmul.f32 %v230_v54, %v181_v62 }
 0x224   :  { %v182_v2 = vmul.f32 %v300_v0, %v154_v37  ;;  %v202_v3 = vadd.f32 %v231_v56, %v191_v63 }
 0x225   :  { %v203_v4 = vadd.f32 %v231_v56, %v192_v1 }
 0x226   :  { %v193_v5 = vmul.f32 %v230_v54, %v182_v2  ;;  %206 = vst [vmem:[#allocation2 + $0x8] sm:$0xff] %v202_v3 }
 0x227   :  { %207 = vst [vmem:[#allocation2 + $0x10] sm:$0xff] %v203_v4 }
 0x228   :  { %v204_v6 = vadd.f32 %v231_v56, %v193_v5 }
 0x22a   :  { %208 = vst [vmem:[#allocation2 + $0x18] sm:$0xff] %v204_v6 }
 0x22b   :  { %312 = shalt.err (!%p309_p4)
}
 0x22c   :  { %s313_s23 = scalar_lea.hbm %s424_s5, 512 }
 0x22d   :  { %p314_p5 = scmp.ne.s32.totalorder %s424_s5, %s313_s23  ;;  %p317_p6 = scmp.lt.u32.totalorder %s313_s23, %s424_s5 }
 0x22f   :  { %p319_p7 = pnand %p317_p6, %p314_p5 }
 0x231   :  { %322 = shalt.err (!%p319_p7)
}
 0x232   :  { %s326_s28 = smov 128   ;;  %s327_s29 = smov 8  }
 0x233   :  { %220 = dma.vmem_to_hbm [thread:$0]  %s215_s3, 512, %s424_s5, [#allocation3], %s326_s28, %s326_s28, %s327_s29  }
 0x234   :  { %323 = dma.done.wait [#allocation3], 512  }
 0x235   :  { %324 = vsyncadd [#allocation3], 4294966784 }
 0x236   :  { %224 = vsyncpa [#allocation3], 1 }

</bundles_post_ra>
